<compile_context>
chip_gen: v7x
topology: tpu7x:2x2x1
jax: 0.10.0
libtpu: 0.0.40
codegen_flags: <defaults>
</compile_context>

<pallas_src>
import math

import jax
import jax.numpy as jnp
from jax.experimental import pallas as pl
from jax.experimental.pallas import tpu as pltpu


LANE = 128
_MIN_SPLIT = 512  # if B >= 2*_MIN_SPLIT, use >=2 grid steps (v7x has 2 TCs)


def _round_up(n, m):
    return ((n + m - 1) // m) * m


# --------------------------------------------------------------------------- #
# Kernel: whole 4-layer MLP fused, f32 accumulation on the MXU.
# --------------------------------------------------------------------------- #
def mlp_kernel(x_ref, w1_ref, b1_ref, w2_ref, b2_ref, w3_ref, b3_ref,
               w4_ref, b4_ref, o_ref):
    wdt = w1_ref.dtype
    x = x_ref[...].astype(wdt)
    h = jnp.dot(x, w1_ref[...], preferred_element_type=jnp.float32)
    h = jnp.maximum(h + b1_ref[...], 0.0)
    h = jnp.dot(h.astype(wdt), w2_ref[...], preferred_element_type=jnp.float32)
    h = jnp.maximum(h + b2_ref[...], 0.0)
    h = jnp.dot(h.astype(wdt), w3_ref[...], preferred_element_type=jnp.float32)
    h = jnp.maximum(h + b3_ref[...], 0.0)
    out = jnp.dot(h.astype(wdt), w4_ref[...],
                  preferred_element_type=jnp.float32) + b4_ref[...]
    o_ref[...] = out.astype(o_ref.dtype)


# --------------------------------------------------------------------------- #
# One-time weight packing (pad hidden dim to lane multiple, cast weights).
# --------------------------------------------------------------------------- #
def pack_params(params, *, weights_dtype=jnp.bfloat16):
    """Pad/cast weights once so the forward pass launches no extra XLA kernels.

    Weights are (in, out) = PyTorch weight transposed.  Hidden dim is padded
    to a multiple of 128 (exact: padded columns/rows and biases are zero and
    ReLU(0)=0).  Biases are kept f32 (added to the f32 accumulator).
    """
    w1, b1 = params["w1"], params["b1"]
    w2, b2 = params["w2"], params["b2"]
    w3, b3 = params["w3"], params["b3"]
    w4, b4 = params["w4"], params["b4"]
    in_dim, hidden = w1.shape
    out_dim = w4.shape[1]
    hid_p = _round_up(hidden, LANE)

    def padw(w, rows, cols):
        return jnp.pad(w, ((0, rows - w.shape[0]),
                           (0, cols - w.shape[1]))).astype(weights_dtype)

    def padb(b, cols):
        b = b.reshape(1, -1)
        return jnp.pad(b, ((0, 0), (0, cols - b.shape[1]))).astype(jnp.float32)

    return dict(
        w1=padw(w1, in_dim, hid_p), b1=padb(b1, hid_p),
        w2=padw(w2, hid_p, hid_p), b2=padb(b2, hid_p),
        w3=padw(w3, hid_p, hid_p), b3=padb(b3, hid_p),
        w4=padw(w4, hid_p, out_dim), b4=padb(b4, out_dim),
        dims=(int(in_dim), int(hidden), int(out_dim)),  # true (unpadded) dims
    )


# --------------------------------------------------------------------------- #
# Forward wrapper.
# --------------------------------------------------------------------------- #
def mlp_forward(x, packed, *, batch_tile=1024):
    """x: (B, input_dim) float32 (or a dict of arrays, concatenated on the
    last axis over sorted keys, like the PyTorch module).  `packed` comes from
    pack_params()."""
    if isinstance(x, dict):
        x = jnp.concatenate([x[k] for k in sorted(x)], axis=-1)

    B, in_dim = x.shape
    in_dim_true, hidden, out_dim = packed["dims"]
    assert in_dim == in_dim_true, (in_dim, in_dim_true)
    hid_p = packed["w1"].shape[1]

    # Even-split batch tiling (multiple of 8 sublanes).  >=2 grid steps when
    # the batch is large enough for v7x's two TensorCores to both get work.
    num_steps = pl.cdiv(B, batch_tile)
    if num_steps < 2 and B >= 2 * _MIN_SPLIT:
        num_steps = 2
    bt = _round_up(pl.cdiv(B, num_steps), 8)
    grid = (pl.cdiv(B, bt),)  # ragged last block is masked by Pallas

    def invariant(shape):
        # Whole-array block, same block index on every grid step (resident).
        return pl.BlockSpec(shape, lambda i: (0,) * len(shape))

    # Cost estimate from TRUE (unpadded) dims.
    flops = 2 * B * (in_dim * hidden + 2 * hidden * hidden + hidden * out_dim)
    bytes_accessed = (
        x.size * x.dtype.itemsize
        + sum(packed[k].size * packed[k].dtype.itemsize
              for k in ("w1", "b1", "w2", "b2", "w3", "b3", "w4", "b4"))
        + B * out_dim * x.dtype.itemsize)

    return pl.pallas_call(
        mlp_kernel,
        out_shape=jax.ShapeDtypeStruct((B, out_dim), x.dtype),
        grid_spec=pltpu.PrefetchScalarGridSpec(
            num_scalar_prefetch=0,
            grid=grid,
            in_specs=[
                pl.BlockSpec((bt, in_dim), lambda i: (i, 0)),  # x, unpadded
                invariant((in_dim, hid_p)),  # w1
                invariant((1, hid_p)),       # b1
                invariant((hid_p, hid_p)),   # w2
                invariant((1, hid_p)),       # b2
                invariant((hid_p, hid_p)),   # w3
                invariant((1, hid_p)),       # b3
                invariant((hid_p, out_dim)), # w4 (cols unpadded)
                invariant((1, out_dim)),     # b4
            ],
            out_specs=pl.BlockSpec((bt, out_dim), lambda i: (i, 0)),
        ),
        compiler_params=pltpu.CompilerParams(
            dimension_semantics=("parallel",)),
        cost_estimate=pl.CostEstimate(
            flops=flops, transcendentals=0, bytes_accessed=bytes_accessed),
    )(x, packed["w1"], packed["b1"], packed["w2"], packed["b2"],
      packed["w3"], packed["b3"], packed["w4"], packed["b4"])


# --------------------------------------------------------------------------- #
# Init + pure-JAX reference (mirrors the PyTorch module).
# --------------------------------------------------------------------------- #
def init_linear(key, fan_in, fan_out):
    # PyTorch nn.Linear default init: U(-1/sqrt(fan_in), 1/sqrt(fan_in))
    kw, kb = jax.random.split(key)
    bound = 1.0 / math.sqrt(fan_in)
    # stored as (in, out) = PyTorch weight transposed
    w = jax.random.uniform(kw, (fan_in, fan_out), jnp.float32, -bound, bound)
    b = jax.random.uniform(kb, (1, fan_out), jnp.float32, -bound, bound)
    return w, b


def make_params(key, input_dim, output_dim, hidden=64):
    k1, k2, k3, k4 = jax.random.split(key, 4)
    w1, b1 = init_linear(k1, input_dim, hidden)
    w2, b2 = init_linear(k2, hidden, hidden)
    w3, b3 = init_linear(k3, hidden, hidden)
    w4, b4 = init_linear(k4, hidden, output_dim)
    return dict(w1=w1, b1=b1, w2=w2, b2=b2, w3=w3, b3=b3, w4=w4, b4=b4)


def mlp_reference(x, p):
    h = jnp.maximum(x @ p["w1"] + p["b1"], 0.0)
    h = jnp.maximum(h @ p["w2"] + p["b2"], 0.0)
    h = jnp.maximum(h @ p["w3"] + p["b3"], 0.0)
    return h @ p["w4"] + p["b4"]


if __name__ == "__main__":
    key = jax.random.PRNGKey(0)
    k_x, k_p = jax.random.split(key)

    B, input_dim, output_dim = 16, 32, 16
    x = jax.random.normal(k_x, (B, input_dim), jnp.float32)
    params = make_params(k_p, input_dim, output_dim)
    ref = mlp_reference(x, params)

    # f32 weights: exact parity with the f32 PyTorch module.
    packed_f32 = pack_params(params, weights_dtype=jnp.float32)
    out = jax.block_until_ready(mlp_forward(x, packed_f32))
    assert out.shape == (B, output_dim)
    assert jnp.allclose(out, ref, atol=1e-5, rtol=1e-5)

    # Ragged (non tile-divisible) batch: Pallas masks the last block.
    x2 = jax.random.normal(k_x, (13, input_dim), jnp.float32)
    out2 = jax.block_until_ready(mlp_forward(x2, packed_f32))
    assert out2.shape == (13, output_dim)
    assert jnp.allclose(out2, mlp_reference(x2, params), atol=1e-5, rtol=1e-5)

    # Serving default: bf16 weights, f32 accumulation (looser tolerance).
    packed_bf16 = pack_params(params)
    out3 = jax.block_until_ready(mlp_forward(x, packed_bf16))
    assert out3.shape == (B, output_dim)
    assert jnp.allclose(out3, ref, atol=5e-2, rtol=5e-2)

    print("KERNEL_OK")
</pallas_src>

<mosaic_0001>
module attributes {stable_mosaic.version = 11 : i64} {
  func.func @mlp_kernel(%arg0: i32, %arg1: memref<16x32xf32, #tpu.memory_space<vmem>>, %arg2: memref<32x128xf32, #tpu.memory_space<vmem>>, %arg3: memref<1x128xf32, #tpu.memory_space<vmem>>, %arg4: memref<128x128xf32, #tpu.memory_space<vmem>>, %arg5: memref<1x128xf32, #tpu.memory_space<vmem>>, %arg6: memref<128x128xf32, #tpu.memory_space<vmem>>, %arg7: memref<1x128xf32, #tpu.memory_space<vmem>>, %arg8: memref<128x16xf32, #tpu.memory_space<vmem>>, %arg9: memref<1x16xf32, #tpu.memory_space<vmem>>, %arg10: memref<16x16xf32, #tpu.memory_space<vmem>>) attributes {dimension_semantics = [#tpu.dimension_semantics<parallel>], iteration_bounds = array<i64: 1>, scalar_prefetch = 0 : i64, scratch_operands = 0 : i64, tpu.core_type = #tpu.core_type<tc>, window_params = [{transform_indices = @transform_0, window_bounds = array<i64: 16, 32>}, {pipeline_mode = #tpu.pipeline_mode<synchronous>, transform_indices = @transform_1, window_bounds = array<i64: 32, 128>}, {pipeline_mode = #tpu.pipeline_mode<synchronous>, transform_indices = @transform_2, window_bounds = array<i64: 1, 128>}, {pipeline_mode = #tpu.pipeline_mode<synchronous>, transform_indices = @transform_3, window_bounds = array<i64: 128, 128>}, {pipeline_mode = #tpu.pipeline_mode<synchronous>, transform_indices = @transform_4, window_bounds = array<i64: 1, 128>}, {pipeline_mode = #tpu.pipeline_mode<synchronous>, transform_indices = @transform_5, window_bounds = array<i64: 128, 128>}, {pipeline_mode = #tpu.pipeline_mode<synchronous>, transform_indices = @transform_6, window_bounds = array<i64: 1, 128>}, {pipeline_mode = #tpu.pipeline_mode<synchronous>, transform_indices = @transform_7, window_bounds = array<i64: 128, 16>}, {pipeline_mode = #tpu.pipeline_mode<synchronous>, transform_indices = @transform_8, window_bounds = array<i64: 1, 16>}, {transform_indices = @transform_9, window_bounds = array<i64: 16, 16>}]} {
    %c0 = arith.constant 0 : index
    %c0_0 = arith.constant 0 : index
    %0 = vector.load %arg1[%c0, %c0_0] : memref<16x32xf32, #tpu.memory_space<vmem>>, vector<16x32xf32>
    %c0_1 = arith.constant 0 : index
    %c0_2 = arith.constant 0 : index
    %1 = vector.load %arg2[%c0_1, %c0_2] : memref<32x128xf32, #tpu.memory_space<vmem>>, vector<32x128xf32>
    %cst = arith.constant dense<0.000000e+00> : vector<16x128xf32>
    %2 = tpu.matmul %0, %1, %cst {dimension_numbers = #tpu.dot_dimension_numbers<[1], [0], [0], [1], [0, 0, 1, 1], [], []>} : vector<16x32xf32>, vector<32x128xf32>, vector<16x128xf32> -> vector<16x128xf32>
    %c0_3 = arith.constant 0 : index
    %c0_4 = arith.constant 0 : index
    %3 = vector.load %arg3[%c0_3, %c0_4] : memref<1x128xf32, #tpu.memory_space<vmem>>, vector<1x128xf32>
    %4 = vector.broadcast %3 : vector<1x128xf32> to vector<16x128xf32>
    %5 = arith.addf %2, %4 : vector<16x128xf32>
    %cst_5 = arith.constant 0.000000e+00 : f32
    %6 = vector.broadcast %cst_5 : f32 to vector<16x128xf32>
    %7 = arith.maximumf %5, %6 : vector<16x128xf32>
    %c0_6 = arith.constant 0 : index
    %c0_7 = arith.constant 0 : index
    %8 = vector.load %arg4[%c0_6, %c0_7] : memref<128x128xf32, #tpu.memory_space<vmem>>, vector<128x128xf32>
    %cst_8 = arith.constant dense<0.000000e+00> : vector<16x128xf32>
    %9 = tpu.matmul %7, %8, %cst_8 {dimension_numbers = #tpu.dot_dimension_numbers<[1], [0], [0], [1], [0, 0, 1, 1], [], []>} : vector<16x128xf32>, vector<128x128xf32>, vector<16x128xf32> -> vector<16x128xf32>
    %c0_9 = arith.constant 0 : index
    %c0_10 = arith.constant 0 : index
    %10 = vector.load %arg5[%c0_9, %c0_10] : memref<1x128xf32, #tpu.memory_space<vmem>>, vector<1x128xf32>
    %11 = vector.broadcast %10 : vector<1x128xf32> to vector<16x128xf32>
    %12 = arith.addf %9, %11 : vector<16x128xf32>
    %cst_11 = arith.constant 0.000000e+00 : f32
    %13 = vector.broadcast %cst_11 : f32 to vector<16x128xf32>
    %14 = arith.maximumf %12, %13 : vector<16x128xf32>
    %c0_12 = arith.constant 0 : index
    %c0_13 = arith.constant 0 : index
    %15 = vector.load %arg6[%c0_12, %c0_13] : memref<128x128xf32, #tpu.memory_space<vmem>>, vector<128x128xf32>
    %cst_14 = arith.constant dense<0.000000e+00> : vector<16x128xf32>
    %16 = tpu.matmul %14, %15, %cst_14 {dimension_numbers = #tpu.dot_dimension_numbers<[1], [0], [0], [1], [0, 0, 1, 1], [], []>} : vector<16x128xf32>, vector<128x128xf32>, vector<16x128xf32> -> vector<16x128xf32>
    %c0_15 = arith.constant 0 : index
    %c0_16 = arith.constant 0 : index
    %17 = vector.load %arg7[%c0_15, %c0_16] : memref<1x128xf32, #tpu.memory_space<vmem>>, vector<1x128xf32>
    %18 = vector.broadcast %17 : vector<1x128xf32> to vector<16x128xf32>
    %19 = arith.addf %16, %18 : vector<16x128xf32>
    %cst_17 = arith.constant 0.000000e+00 : f32
    %20 = vector.broadcast %cst_17 : f32 to vector<16x128xf32>
    %21 = arith.maximumf %19, %20 : vector<16x128xf32>
    %c0_18 = arith.constant 0 : index
    %c0_19 = arith.constant 0 : index
    %22 = vector.load %arg8[%c0_18, %c0_19] : memref<128x16xf32, #tpu.memory_space<vmem>>, vector<128x16xf32>
    %cst_20 = arith.constant dense<0.000000e+00> : vector<16x16xf32>
    %23 = tpu.matmul %21, %22, %cst_20 {dimension_numbers = #tpu.dot_dimension_numbers<[1], [0], [0], [1], [0, 0, 1, 1], [], []>} : vector<16x128xf32>, vector<128x16xf32>, vector<16x16xf32> -> vector<16x16xf32>
    %c0_21 = arith.constant 0 : index
    %c0_22 = arith.constant 0 : index
    %24 = vector.load %arg9[%c0_21, %c0_22] : memref<1x16xf32, #tpu.memory_space<vmem>>, vector<1x16xf32>
    %25 = vector.broadcast %24 : vector<1x16xf32> to vector<16x16xf32>
    %26 = arith.addf %23, %25 : vector<16x16xf32>
    %c0_23 = arith.constant 0 : index
    %c0_24 = arith.constant 0 : index
    %27 = vector.load %arg10[%c0_23, %c0_24] : memref<16x16xf32, #tpu.memory_space<vmem>>, vector<16x16xf32>
    tpu.vector_store %arg10[%c0_23, %c0_24], %26 {strides = array<i32>} : memref<16x16xf32, #tpu.memory_space<vmem>>, vector<16x16xf32>,
    return
  }
  func.func @transform_0(%arg0: i32) -> (i32, i32) {
    %c0_i32 = arith.constant 0 : i32
    %c0_i32_0 = arith.constant 0 : i32
    return %arg0, %c0_i32 : i32, i32
  }
  func.func @transform_1(%arg0: i32) -> (i32, i32) {
    %c0_i32 = arith.constant 0 : i32
    %c0_i32_0 = arith.constant 0 : i32
    %c0_i32_1 = arith.constant 0 : i32
    return %c0_i32, %c0_i32_0 : i32, i32
  }
  func.func @transform_2(%arg0: i32) -> (i32, i32) {
    %c0_i32 = arith.constant 0 : i32
    %c0_i32_0 = arith.constant 0 : i32
    %c0_i32_1 = arith.constant 0 : i32
    return %c0_i32, %c0_i32_0 : i32, i32
  }
  func.func @transform_3(%arg0: i32) -> (i32, i32) {
    %c0_i32 = arith.constant 0 : i32
    %c0_i32_0 = arith.constant 0 : i32
    %c0_i32_1 = arith.constant 0 : i32
    return %c0_i32, %c0_i32_0 : i32, i32
  }
  func.func @transform_4(%arg0: i32) -> (i32, i32) {
    %c0_i32 = arith.constant 0 : i32
    %c0_i32_0 = arith.constant 0 : i32
    %c0_i32_1 = arith.constant 0 : i32
    return %c0_i32, %c0_i32_0 : i32, i32
  }
  func.func @transform_5(%arg0: i32) -> (i32, i32) {
    %c0_i32 = arith.constant 0 : i32
    %c0_i32_0 = arith.constant 0 : i32
    %c0_i32_1 = arith.constant 0 : i32
    return %c0_i32, %c0_i32_0 : i32, i32
  }
  func.func @transform_6(%arg0: i32) -> (i32, i32) {
    %c0_i32 = arith.constant 0 : i32
    %c0_i32_0 = arith.constant 0 : i32
    %c0_i32_1 = arith.constant 0 : i32
    return %c0_i32, %c0_i32_0 : i32, i32
  }
  func.func @transform_7(%arg0: i32) -> (i32, i32) {
    %c0_i32 = arith.constant 0 : i32
    %c0_i32_0 = arith.constant 0 : i32
    %c0_i32_1 = arith.constant 0 : i32
    return %c0_i32, %c0_i32_0 : i32, i32
  }
  func.func @transform_8(%arg0: i32) -> (i32, i32) {
    %c0_i32 = arith.constant 0 : i32
    %c0_i32_0 = arith.constant 0 : i32
    %c0_i32_1 = arith.constant 0 : i32
    return %c0_i32, %c0_i32_0 : i32, i32
  }
  func.func @transform_9(%arg0: i32) -> (i32, i32) {
    %c0_i32 = arith.constant 0 : i32
    %c0_i32_0 = arith.constant 0 : i32
    return %arg0, %c0_i32 : i32, i32
  }
}

</mosaic_0001>

<bundles_post_ra>
// kernel: tpu_custom_call.1
= control target key start
LH: loop header
LB: loop body
LE: loop exit
PB: predicated region body
PF: predicated region fallthrough
CT: control target
= control target key end

     0   :  { %14 = vsyncpa [#allocation3], 0  ;;  %s1056_s0 = inlined_call_operand.vmem [shape: f32[16,32], index: 0, kind: input, shape index: {}]   ;;  %s1057_s1 = inlined_call_operand.hbm [shape: f32[32,128], index: 1, kind: input, shape index: {}]   ;;  %s1058_s2 = inlined_call_operand.vmem [shape: f32[1,128], index: 2, kind: input, shape index: {}]   ;;  %s1059_s3 = inlined_call_operand.vmem [shape: f32[128,128], index: 3, kind: input, shape index: {}]   ;;  %s1060_s4 = inlined_call_operand.vmem [shape: f32[1,128], index: 4, kind: input, shape index: {}]   ;;  %s1061_s5 = inlined_call_operand.hbm [shape: f32[128,128], index: 5, kind: input, shape index: {}]   ;;  %s1062_s6 = inlined_call_operand.vmem [shape: f32[1,128], index: 6, kind: input, shape index: {}]   ;;  %s1063_s7 = inlined_call_operand.vmem [shape: f32[128,16], index: 7, kind: input, shape index: {}]   ;;  %s1064_s8 = inlined_call_operand.vmem [shape: f32[1,16], index: 8, kind: input, shape index: {}]   ;;  %s1065_s9 = inlined_call_operand.hbm [shape: f32[16,16], index: 9, kind: output, shape index: {}]  }
   0x1   :  { %15 = vsyncpa [#allocation6], 0 }
   0x2   :  { %16 = vsyncpa [#allocation4], 0  ;;  %s840_s30 = smov [#allocation2]   ;;  %s768_s13 = scalar_lea.hbm %s1057_s1, 512 }
   0x3   :  { %s24_s10 = sshll.u32 %s840_s30, 4  ;;  %p769_p0 = scmp.ne.s32.totalorder %s1057_s1, %s768_s13  ;;  %s25_s10 = int_to_ptr.vmem [resolvable:$true] %s24_s10 }
   0x4   :  { %p772_p1 = scmp.lt.u32.totalorder %s768_s13, %s1057_s1 }
   0x6   :  { %p774_p2 = pnand %p772_p1, %p769_p0 }
   0x8   :  { %777 = shalt.err (!%p774_p2)
}
   0x9   :  { %s778_s18 = scalar_lea.vmem %s25_s10, 512  ;;  %p783_p4 = scmp.lt.s32.totalorder %s25_s10, %s25_s10 }
   0xa   :  { %p779_p3 = scmp.ne.s32.totalorder %s25_s10, %s778_s18  ;;  %p784_p5 = scmp.lt.s32.totalorder %s778_s18, %s778_s18 }
   0xc   :  { %p785_p6 = por %p784_p5, %p783_p4 }
   0xe   :  { %p786_p7 = pnand %p785_p6, %p779_p3 }
  0x10   :  { %789 = shalt.err (!%p786_p7)
}
  0x11   :  { %s841_s19 = smov 128   ;;  %s842_s20 = smov 8  }
  0x12   :  { %30 = dma.hbm_to_vmem [thread:$0]  %s1057_s1, 512, %s25_s10, [#allocation3], %s841_s19, %s841_s19, %s842_s20  }
  0x13   :  { %s843_s23 = smov [#allocation5]   ;;  %s790_s27 = scalar_lea.hbm %s1061_s5, 2048 }
  0x14   :  { %s42_s24 = sshll.u32 %s843_s23, 4  ;;  %p791_p8 = scmp.ne.s32.totalorder %s1061_s5, %s790_s27  ;;  %s43_s24 = int_to_ptr.vmem [resolvable:$true] %s42_s24 }
  0x15   :  { %p794_p9 = scmp.lt.u32.totalorder %s790_s27, %s1061_s5 }
  0x17   :  { %p796_p10 = pnand %p794_p9, %p791_p8 }
  0x19   :  { %799 = shalt.err (!%p796_p10)
}
  0x1a   :  { %s800_s12 = scalar_lea.vmem %s43_s24, 2048  ;;  %p805_p12 = scmp.lt.s32.totalorder %s43_s24, %s43_s24 }
  0x1b   :  { %p801_p11 = scmp.ne.s32.totalorder %s43_s24, %s800_s12  ;;  %p806_p13 = scmp.lt.s32.totalorder %s800_s12, %s800_s12 }
  0x1d   :  { %p807_p0 = por %p806_p13, %p805_p12 }
  0x1f   :  { %p808_p1 = pnand %p807_p0, %p801_p11 }
  0x21   :  { %811 = shalt.err (!%p808_p1)
}
  0x22   :  { %48 = dma.hbm_to_vmem [thread:$0]  %s1061_s5, 2048, %s43_s24, [#allocation6], %s841_s19, %s841_s19, %s842_s20  }
  0x23   :  { %834 = dma.done.wait [#allocation3], 512  }
  0x24   :  { %835 = vsyncadd [#allocation3], 4294966784 }
  0x25   :  { %836 = dma.done.wait [#allocation6], 2048  }
  0x26   :  { %837 = vsyncadd [#allocation6], 4294965248  ;;  %vm74_vm0 = vcmask 261120   ;;  %v63_v0 = vld [vmem:[#allocation2] sm:$0xff]  ;;  %v64_v1 = vld [vmem:[#allocation2 + $0x8] sm:$0xff]  ;;  %vm456_vm1 = vcmask 130048  }
  0x27   :  { %v65_v2 = vld [vmem:[#allocation2 + $0x10] sm:$0xff]  ;;  %v659_v3 = vpack.c.bf16 %v64_v1, %v63_v0  ;;  %v66_v4 = vld [vmem:[#allocation2 + $0x18] sm:$0xff]  ;;  %v61_v5 = vld [vmem:[%s1056_s0] sm:$0xff] }
  0x28   :  { %v663_v6 = vpack.c.bf16 %v66_v4, %v65_v2  ;;  %551 = vmatprep.mubr.msk.f32.mxu0 %vm74_vm0, %v61_v5  ;;  %v158_v7 = vld [vmem:[%s1059_s3] sm:$0xff]  ;;  %v159_v8 = vld [vmem:[%s1059_s3 + $0x8] sm:$0xff]  ;;  %v160_v9 = vld [vmem:[%s1059_s3 + $0x10] sm:$0xff] }
  0x29   :  { %660 = vmatprep.subr.bf16.mxu0 %v659_v3  ;;  %v667_v10 = vpack.c.bf16 %v159_v8, %v158_v7  ;;  %v161_v11 = vld [vmem:[%s1059_s3 + $0x18] sm:$0xff]  ;;  %v162_v13 = vld [vmem:[%s1059_s3 + $0x20] sm:$0xff]  ;;  %v163_v14 = vld [vmem:[%s1059_s3 + $0x28] sm:$0xff] }
  0x2a   :  { %662 = vmatpush3.bf16.msra.mxu0 %v659_v3  ;;  %v671_v12 = vpack.c.bf16 %v161_v11, %v160_v9  ;;  %v675_v15 = vpack.c.bf16 %v163_v14, %v162_v13  ;;  %v62_v16 = vld [vmem:[%s1056_s0 + $0x8] sm:$0xff]  ;;  %v164_v17 = vld [vmem:[%s1059_s3 + $0x30] sm:$0xff]  ;;  %v165_v18 = vld [vmem:[%s1059_s3 + $0x38] sm:$0xff] }
  0x2b   :  { %664 = vmatprep.subr.bf16.mxu0 %v663_v6  ;;  %668 = vmatprep.subr.bf16.mxu1 %v667_v10  ;;  %v679_v19 = vpack.c.bf16 %v165_v18, %v164_v17  ;;  %v166_v20 = vld [vmem:[%s1059_s3 + $0x40] sm:$0xff]  ;;  %v167_v21 = vld [vmem:[%s1059_s3 + $0x48] sm:$0xff]  ;;  %v168_v23 = vld [vmem:[%s1059_s3 + $0x50] sm:$0xff] }
  0x2c   :  { %670 = vmatpush3.bf16.msra.mxu1 %v667_v10  ;;  %v683_v22 = vpack.c.bf16 %v167_v21, %v166_v20  ;;  %v169_v24 = vld [vmem:[%s1059_s3 + $0x58] sm:$0xff]  ;;  %v170_v26 = vld [vmem:[%s1059_s3 + $0x60] sm:$0xff]  ;;  %v171_v27 = vld [vmem:[%s1059_s3 + $0x68] sm:$0xff] }
  0x2d   :  { %672 = vmatprep.subr.bf16.mxu1 %v671_v12  ;;  %v687_v25 = vpack.c.bf16 %v169_v24, %v168_v23  ;;  %v691_v28 = vpack.c.bf16 %v171_v27, %v170_v26  ;;  %v172_v29 = vld [vmem:[%s1059_s3 + $0x70] sm:$0xff]  ;;  %v173_v30 = vld [vmem:[%s1059_s3 + $0x78] sm:$0xff]  ;;  %v258_v32 = vld [vmem:[#allocation5] sm:$0xff] }
  0x2e   :  { %666 = vmatpush3.bf16.msra.mxu0 %v663_v6  ;;  %v695_v31 = vpack.c.bf16 %v173_v30, %v172_v29  ;;  %v259_v33 = vld [vmem:[#allocation5 + $0x8] sm:$0xff]  ;;  %v260_v34 = vld [vmem:[#allocation5 + $0x10] sm:$0xff]  ;;  %v261_v36 = vld [vmem:[#allocation5 + $0x18] sm:$0xff] }
  0x2f   :  { %v699_v35 = vpack.c.bf16 %v259_v33, %v258_v32  ;;  %v703_v37 = vpack.c.bf16 %v261_v36, %v260_v34  ;;  %v262_v38 = vld [vmem:[#allocation5 + $0x20] sm:$0xff]  ;;  %v263_v39 = vld [vmem:[#allocation5 + $0x28] sm:$0xff]  ;;  %v264_v41 = vld [vmem:[#allocation5 + $0x30] sm:$0xff] }
  0x30   :  { %674 = vmatpush3.bf16.msra.mxu1 %v671_v12  ;;  %v707_v40 = vpack.c.bf16 %v263_v39, %v262_v38  ;;  %v265_v42 = vld [vmem:[#allocation5 + $0x38] sm:$0xff]  ;;  %v266_v44 = vld [vmem:[#allocation5 + $0x40] sm:$0xff]  ;;  %v267_v45 = vld [vmem:[#allocation5 + $0x48] sm:$0xff] }
  0x31   :  { %552 = vmatmul.mubr.msk.f32.vlgmr.msra.gmra.mrb[0].mxu0 %vm74_vm0, %v62_v16  ;;  %676 = vmatprep.subr.bf16.mxu1 %v675_v15  ;;  %v711_v43 = vpack.c.bf16 %v265_v42, %v264_v41  ;;  %v715_v46 = vpack.c.bf16 %v267_v45, %v266_v44  ;;  %v268_v47 = vld [vmem:[#allocation5 + $0x50] sm:$0xff]  ;;  %v269_v48 = vld [vmem:[#allocation5 + $0x58] sm:$0xff]  ;;  %v270_v50 = vld [vmem:[#allocation5 + $0x60] sm:$0xff] }
  0x32   :  { %700 = vmatprep.subr.bf16.mxu0 %v699_v35  ;;  %v719_v49 = vpack.c.bf16 %v269_v48, %v268_v47  ;;  %v271_v51 = vld [vmem:[#allocation5 + $0x68] sm:$0xff]  ;;  %v477_v53 = vld [vmem:[%s1058_s2] ss:$0 sm:$0xff]  ;;  %v272_v60 = vld [vmem:[#allocation5 + $0x70] sm:$0xff] }
  0x33   :  { %702 = vmatpush3.bf16.msra.mxu0 %v699_v35  ;;  %v723_v52 = vpack.c.bf16 %v271_v51, %v270_v50  ;;  %v273_v61 = vld [vmem:[#allocation5 + $0x78] sm:$0xff]  ;;  %v358_v63 = vld [vmem:[%s1063_s7] sm:$0xff]  ;;  %v359_v0 = vld [vmem:[%s1063_s7 + $0x8] sm:$0xff] }
  0x34   :  { %678 = vmatpush3.bf16.msra.mxu1 %v675_v15  ;;  %704 = vmatprep.subr.bf16.mxu0 %v703_v37  ;;  %v727_v62 = vpack.c.bf16 %v273_v61, %v272_v60  ;;  %v360_v1 = vld [vmem:[%s1063_s7 + $0x10] sm:$0xff]  ;;  %v731_v2 = vpack.c.bf16 %v359_v0, %v358_v63  ;;  %v361_v3 = vld [vmem:[%s1063_s7 + $0x18] sm:$0xff]  ;;  %v362_v5 = vld [vmem:[%s1063_s7 + $0x20] sm:$0xff] }
  0x35   :  { %680 = vmatprep.subr.bf16.mxu1 %v679_v19  ;;  %v735_v4 = vpack.c.bf16 %v361_v3, %v360_v1  ;;  %v363_v6 = vld [vmem:[%s1063_s7 + $0x28] sm:$0xff]  ;;  %v364_v8 = vld [vmem:[%s1063_s7 + $0x30] sm:$0xff]  ;;  %v365_v9 = vld [vmem:[%s1063_s7 + $0x38] sm:$0xff] }
  0x36   :  { %v739_v7 = vpack.c.bf16 %v363_v6, %v362_v5  ;;  %v743_v10 = vpack.c.bf16 %v365_v9, %v364_v8  ;;  %v366_v11 = vld [vmem:[%s1063_s7 + $0x40] sm:$0xff]  ;;  %v367_v12 = vld [vmem:[%s1063_s7 + $0x48] sm:$0xff]  ;;  %v368_v14 = vld [vmem:[%s1063_s7 + $0x50] sm:$0xff] }
  0x37   :  { %706 = vmatpush3.bf16.msra.mxu0 %v703_v37  ;;  %v747_v13 = vpack.c.bf16 %v367_v12, %v366_v11  ;;  %v369_v15 = vld [vmem:[%s1063_s7 + $0x58] sm:$0xff]  ;;  %v370_v17 = vld [vmem:[%s1063_s7 + $0x60] sm:$0xff]  ;;  %v371_v18 = vld [vmem:[%s1063_s7 + $0x68] sm:$0xff] }
  0x38   :  { %682 = vmatpush3.bf16.msra.mxu1 %v679_v19  ;;  %708 = vmatprep.subr.bf16.mxu0 %v707_v40  ;;  %v751_v16 = vpack.c.bf16 %v369_v15, %v368_v14  ;;  %v755_v19 = vpack.c.bf16 %v371_v18, %v370_v17  ;;  %v480_v20 = vld [vmem:[%s1060_s4] ss:$0 sm:$0xff]  ;;  %v372_v27 = vld [vmem:[%s1063_s7 + $0x70] sm:$0xff] }
  0x39   :  { %684 = vmatprep.subr.bf16.mxu1 %v683_v22  ;;  %v481_v30 = vld [vmem:[%s1062_s6] ss:$0 sm:$0xff] }
  0x3a   :  { %v482_v37 = vld [vmem:[%s1064_s8] ss:$0 sm:$0xff] }
  0x3b   :  { %710 = vmatpush3.bf16.msra.mxu0 %v707_v40 }
  0x3c   :  { %686 = vmatpush3.bf16.msra.mxu1 %v683_v22  ;;  %712 = vmatprep.subr.bf16.mxu0 %v711_v43 }
  0x3d   :  { %688 = vmatprep.subr.bf16.mxu1 %v687_v25 }
  0x3f   :  { %714 = vmatpush3.bf16.msra.mxu0 %v711_v43 }
  0x40   :  { %690 = vmatpush3.bf16.msra.mxu1 %v687_v25  ;;  %716 = vmatprep.subr.bf16.mxu0 %v715_v46 }
  0x41   :  { %692 = vmatprep.subr.bf16.mxu1 %v691_v28 }
  0x43   :  { %718 = vmatpush3.bf16.msra.mxu0 %v715_v46 }
  0x44   :  { %694 = vmatpush3.bf16.msra.mxu1 %v691_v28  ;;  %720 = vmatprep.subr.bf16.mxu0 %v719_v49  ;;  %v373_v28 = vld [vmem:[%s1063_s7 + $0x78] sm:$0xff]  ;;  %s844_s7 = smov [#allocation7]  }
  0x45   :  { %696 = vmatprep.subr.bf16.mxu1 %v695_v31  ;;  %v759_v29 = vpack.c.bf16 %v373_v28, %v372_v27  ;;  %s464_s17 = sshll.u32 %s844_s7, 4  ;;  %s465_s17 = int_to_ptr.vmem [resolvable:$true] %s464_s17 }
  0x46   :  { %s812_s6 = scalar_lea.vmem %s465_s17, 256  ;;  %p817_p3 = scmp.lt.s32.totalorder %s465_s17, %s465_s17 }
  0x47   :  { %722 = vmatpush3.bf16.msra.mxu0 %v719_v49  ;;  %p813_p2 = scmp.ne.s32.totalorder %s465_s17, %s812_s6  ;;  %p818_p4 = scmp.lt.s32.totalorder %s812_s6, %s812_s6 }
  0x48   :  { %698 = vmatpush3.bf16.msra.mxu1 %v695_v31  ;;  %724 = vmatprep.subr.bf16.mxu0 %v723_v52 }
  0x49   :  { %732 = vmatprep.subr.bf16.mxu1 %v731_v2  ;;  %p819_p5 = por %p818_p4, %p817_p3 }
  0x4b   :  { %726 = vmatpush3.bf16.msra.mxu0 %v723_v52  ;;  %p820_p6 = pnand %p819_p5, %p813_p2 }
  0x4c   :  { %728 = vmatprep.subr.bf16.mxu0 %v727_v62 }
  0x4f   :  { %730 = vmatpush3.bf16.msra.mxu0 %v727_v62 }
 0x104   :  { %v553_v54 = vpop.f32.mrb[0].mxu0 }
 0x105   :  { %v153_v55 = vadd.f32 %v553_v54, %v477_v53  ;;  %v147_v56 = vpop.f32.mrb[1].mxu0 }
 0x106   :  { %v148_v57 = vadd.f32 %v477_v53, %v147_v56 }
 0x107   :  { %v157_v59 = vmax.f32 %v153_v55, 0.0 }
 0x108   :  { %v156_v58 = vmax.f32 %v148_v57, 0.0 }
 0x10a   :  { %586 = vmatprep.mubr.f32.mxu1 %v156_v58 }
 0x10b   :  { %587 = vmatmul.mubr.f32.vlgmr.msra.gmra.mrb[0].mxu1 %v157_v59 }
 0x10c   :  { %734 = vmatpush3.bf16.msra.mxu1 %v731_v2 }
 0x10d   :  { %736 = vmatprep.subr.bf16.mxu1 %v735_v4 }
 0x110   :  { %738 = vmatpush3.bf16.msra.mxu1 %v735_v4 }
 0x111   :  { %740 = vmatprep.subr.bf16.mxu1 %v739_v7 }
 0x114   :  { %742 = vmatpush3.bf16.msra.mxu1 %v739_v7 }
 0x115   :  { %744 = vmatprep.subr.bf16.mxu1 %v743_v10 }
 0x118   :  { %746 = vmatpush3.bf16.msra.mxu1 %v743_v10 }
 0x119   :  { %748 = vmatprep.subr.bf16.mxu1 %v747_v13 }
 0x11c   :  { %750 = vmatpush3.bf16.msra.mxu1 %v747_v13 }
 0x11d   :  { %752 = vmatprep.subr.bf16.mxu1 %v751_v16 }
 0x120   :  { %754 = vmatpush3.bf16.msra.mxu1 %v751_v16 }
 0x121   :  { %756 = vmatprep.subr.bf16.mxu1 %v755_v19 }
 0x124   :  { %758 = vmatpush3.bf16.msra.mxu1 %v755_v19 }
 0x125   :  { %760 = vmatprep.subr.bf16.mxu1 %v759_v29 }
 0x128   :  { %762 = vmatpush3.bf16.msra.mxu1 %v759_v29 }
 0x1de   :  { %v588_v21 = vpop.f32.mrb[0].mxu1 }
 0x1df   :  { %v253_v22 = vadd.f32 %v588_v21, %v480_v20  ;;  %v247_v23 = vpop.f32.mrb[1].mxu1 }
 0x1e0   :  { %v248_v24 = vadd.f32 %v480_v20, %v247_v23 }
 0x1e1   :  { %v257_v26 = vmax.f32 %v253_v22, 0.0 }
 0x1e2   :  { %v256_v25 = vmax.f32 %v248_v24, 0.0 }
 0x1e4   :  { %621 = vmatprep.mubr.f32.mxu0 %v256_v25 }
 0x1e5   :  { %622 = vmatmul.mubr.f32.vlgmr.msra.gmra.mrb[2].mxu0 %v257_v26 }
 0x2b8   :  { %v623_v31 = vpop.f32.mrb[2].mxu0 }
 0x2b9   :  { %v353_v32 = vadd.f32 %v623_v31, %v481_v30  ;;  %v347_v33 = vpop.f32.mrb[3].mxu0 }
 0x2ba   :  { %v348_v34 = vadd.f32 %v481_v30, %v347_v33 }
 0x2bb   :  { %v357_v36 = vmax.f32 %v353_v32, 0.0 }
 0x2bc   :  { %v356_v35 = vmax.f32 %v348_v34, 0.0 }
 0x2be   :  { %656 = vmatprep.mubr.f32.mxu1 %v356_v35 }
 0x2bf   :  { %657 = vmatmul.mubr.f32.vlgmr.msra.gmra.mrb[2].mxu1 %v357_v36 }
 0x392   :  { %v658_v38 = vpop.f32.mrb[2].mxu1 }
 0x393   :  { %v453_v39 = vadd.f32 %v658_v38, %v482_v37  ;;  %v447_v40 = vpop.f32.mrb[3].mxu1 }
 0x394   :  { %v448_v41 = vadd.f32 %v482_v37, %v447_v40 }
 0x395   :  { %458 = vst.msk [vmem:[#allocation7 + $0x8] sm:$0xff] %vm456_vm1, %v453_v39 }
 0x396   :  { %457 = vst.msk [vmem:[#allocation7] sm:$0xff] %vm456_vm1, %v448_v41 }
 0x397   :  { %823 = shalt.err (!%p820_p6)
}
 0x398   :  { %s824_s8 = scalar_lea.hbm %s1065_s9, 256 }
 0x399   :  { %p825_p7 = scmp.ne.s32.totalorder %s1065_s9, %s824_s8  ;;  %p828_p8 = scmp.lt.u32.totalorder %s824_s8, %s1065_s9 }
 0x39b   :  { %p830_p9 = pnand %p828_p8, %p825_p7 }
 0x39d   :  { %833 = shalt.err (!%p830_p9)
}
 0x39e   :  { %470 = dma.vmem_to_hbm [thread:$0]  %s465_s17, 256, %s1065_s9, [#allocation4], %s841_s19, %s841_s19, %s842_s20  }
 0x39f   :  { %838 = dma.done.wait [#allocation4], 256  }
 0x3a0   :  { %839 = vsyncadd [#allocation4], 4294967040 }
 0x3a1   :  { %474 = vsyncpa [#allocation3], 1 }
 0x3a2   :  { %475 = vsyncpa [#allocation6], 1 }
 0x3a3   :  { %476 = vsyncpa [#allocation4], 1 }

</bundles_post_ra>
